<compile_context>
chip_gen: v7x
topology: tpu7x:2x2x1
jax: 0.10.0
libtpu: 0.0.40
codegen_flags: <defaults>
</compile_context>

<pallas_src>
import functools

import jax
import jax.numpy as jnp
from jax.experimental import pallas as pl
from jax.experimental.pallas import tpu as pltpu


# ----------------------------------------------------------------------------
# Kernel
# ----------------------------------------------------------------------------
def _mean_pool_kernel(x_ref, mask_ref, o_ref, cnt_ref, *, precision):
    # x_ref:    (TB, TS, H) block of last_hidden_state (native dtype)
    # mask_ref: (TB, 1, TS) block of attention_mask (cast to x dtype upstream)
    # o_ref:    (TB, H)     f32 output block, resident across the S grid axis
    # cnt_ref:  (TB, 1)     f32 scratch: token counts, resident across S axis
    s = pl.program_id(1)

    @pl.when(s == 0)
    def _init():
        o_ref[...] = jnp.zeros_like(o_ref)
        cnt_ref[...] = jnp.zeros_like(cnt_ref)

    x = x_ref[...]                                    # (TB, TS, H)
    m = mask_ref[...]                                 # (TB, 1, TS)

    # Masked partial sum over this S chunk on the MXU, f32 accumulation.
    partial = jnp.einsum(
        "bqs,bsh->bqh", m, x,
        preferred_element_type=jnp.float32,
        precision=precision,
    )[:, 0, :]                                        # (TB, H) f32
    o_ref[...] += partial
    cnt_ref[...] += jnp.sum(m, axis=-1, dtype=jnp.float32)   # (TB, 1) exact

    @pl.when(s == pl.num_programs(1) - 1)
    def _finalize():
        inv = 1.0 / jnp.maximum(cnt_ref[...], jnp.float32(1e-9))
        o_ref[...] = o_ref[...] * inv


# ----------------------------------------------------------------------------
# Tiling / wrapper helpers
# ----------------------------------------------------------------------------
def _round_up(x, m):
    return (x + m - 1) // m * m


def _vmem_capacity_bytes() -> int:
    try:
        info = pltpu.get_tpu_info()
        cap = getattr(info, "vmem_capacity_bytes", None)
        if cap:
            return int(cap)
    except Exception:
        pass
    return 128 << 20  # v5e / v6e default


def _choose_tiles(B, S, H, itemsize, target_x_bytes):
    """Pick (tb, ts, B_pad, S_pad) for an x block of (tb, ts, H).

    Block rules enforced:  tb == B_pad or tb % 8 == 0;
                           ts == S_pad or ts % 128 == 0;
    plus tb | B_pad and ts | S_pad.  S is only tiled (reduction grid axis)
    when a minimal full-S block would exceed the byte target; the batch block
    is capped at B_pad // 2 when legal so both v7x TensorCores get work.
    """
    row_bytes = max(1, H * itemsize)

    # --- sequence (reduction) axis -----------------------------------------
    tb_probe = min(B, 8)
    if tb_probe * S * row_bytes <= target_x_bytes or S <= 128:
        ts, S_pad = S, S
    else:
        max_ts = max(128, (target_x_bytes // (tb_probe * row_bytes)) // 128 * 128)
        ts = min(max_ts, _round_up(S, 128))
        S_pad = _round_up(S, ts)
    s_tiled = ts < S

    # --- batch axis ----------------------------------------------------------
    blk_bytes_per_row = ts * row_bytes
    if B <= 8:
        tb, B_pad = B, B
    elif B % 8 != 0 and not s_tiled and B * blk_bytes_per_row <= target_x_bytes:
        # Awkward batch size but everything fits one block: skip pad traffic.
        tb, B_pad = B, B
    else:
        B_pad = _round_up(B, 8)
        budget_tb = max(8, target_x_bytes // blk_bytes_per_row)
        cap = max(8, (min(B_pad // 2, budget_tb) // 8) * 8)
        tb = 8
        for cand in range(cap, 7, -8):
            if B_pad % cand == 0:
                tb = cand
                break
    return tb, ts, B_pad, S_pad


def _x_block_spec(block_shape, index_map, buffer_count):
    """x BlockSpec, 3-deep buffered when requested (fallback if unsupported)."""
    if buffer_count is not None and buffer_count > 2:
        try:
            return pl.BlockSpec(block_shape, index_map,
                                pipeline_mode=pl.Buffered(buffer_count))
        except (TypeError, AttributeError):
            pass
    return pl.BlockSpec(block_shape, index_map)


# ----------------------------------------------------------------------------
# Public entry point
# ----------------------------------------------------------------------------
def mean_pooling(last_hidden_state: jax.Array,
                 attention_mask: jax.Array,
                 *,
                 block_batch: int | None = None,
                 block_seq: int | None = None,
                 vmem_limit_bytes: int | None = None) -> jax.Array:
    """Masked mean pooling over the sequence axis.

    last_hidden_state: [B, S, H] float (f32 or bf16)
    attention_mask:    [B, S]    (int or float, 0/1)
    returns:           [B, H]    float32
    """
    x = last_hidden_state
    B, S, H = x.shape
    if not jnp.issubdtype(x.dtype, jnp.floating):
        x = x.astype(jnp.float32)
    itemsize = jnp.dtype(x.dtype).itemsize

    # Generation-aware VMEM budget / block byte target.
    vmem_cap = _vmem_capacity_bytes()
    if vmem_limit_bytes is None:
        vmem_limit_bytes = min((vmem_cap * 3) // 4, 96 << 20)
    target_x_bytes = min(16 << 20, max(1 << 20, vmem_limit_bytes // 4))

    tb, ts, B_pad, S_pad = _choose_tiles(B, S, H, itemsize, target_x_bytes)
    if block_batch is not None:
        tb = int(block_batch)
        B_pad = _round_up(B, tb)
        assert tb == B_pad or tb % 8 == 0, \
            "block_batch must be a multiple of 8 or cover the full (padded) batch"
    if block_seq is not None:
        ts = int(block_seq)
        S_pad = _round_up(S, ts)
        assert ts == S_pad or ts % 128 == 0, \
            "block_seq must be a multiple of 128 or cover the full (padded) sequence"
    assert B_pad % tb == 0 and S_pad % ts == 0, (B_pad, tb, S_pad, ts)

    # Mask in x dtype (0/1 exact in bf16); zero-pad awkward shapes.
    mask3 = attention_mask.reshape(B, 1, S).astype(x.dtype)
    if B_pad != B or S_pad != S:
        x = jnp.pad(x, ((0, B_pad - B), (0, S_pad - S), (0, 0)))
        mask3 = jnp.pad(mask3, ((0, B_pad - B), (0, 0), (0, S_pad - S)))

    grid = (B_pad // tb, S_pad // ts)
    n_steps = grid[0] * grid[1]
    buffer_count = 3 if n_steps >= 3 else None

    precision = (jax.lax.Precision.HIGHEST
                 if x.dtype == jnp.float32 else jax.lax.Precision.DEFAULT)

    out = pl.pallas_call(
        functools.partial(_mean_pool_kernel, precision=precision),
        out_shape=jax.ShapeDtypeStruct((B_pad, H), jnp.float32),
        grid_spec=pltpu.PrefetchScalarGridSpec(
            num_scalar_prefetch=0,
            grid=grid,
            in_specs=[
                _x_block_spec((tb, ts, H), lambda i, s: (i, s, 0), buffer_count),
                pl.BlockSpec((tb, 1, ts), lambda i, s: (i, 0, s)),
            ],
            out_specs=pl.BlockSpec((tb, H), lambda i, s: (i, 0)),
            scratch_shapes=[pltpu.VMEM((tb, 1), jnp.float32)],
        ),
        compiler_params=pltpu.CompilerParams(
            dimension_semantics=("parallel", "arbitrary"),
            vmem_limit_bytes=int(vmem_limit_bytes),
        ),
    )(x, mask3)

    return out[:B] if B_pad != B else out


# ----------------------------------------------------------------------------
# Reference + self-test
# ----------------------------------------------------------------------------
def _reference(last_hidden_state, attention_mask):
    mask = attention_mask[..., None].astype(jnp.float32)
    sum_emb = jnp.sum(last_hidden_state.astype(jnp.float32) * mask, axis=1)
    sum_mask = jnp.maximum(jnp.sum(mask, axis=1), 1e-9)
    return sum_emb / sum_mask


if __name__ == "__main__":
    key = jax.random.PRNGKey(0)
    k1, k2, k3, k4, k5, k6 = jax.random.split(key, 6)

    # 1) Module-scale tiny test: f32, B=2, S=8, H=32 (single grid step).
    B, S, H = 2, 8, 32
    x = jax.random.normal(k1, (B, S, H), dtype=jnp.float32)
    mask = (jax.random.uniform(k2, (B, S)) > 0.3).astype(jnp.int32)
    mask = mask.at[1, S // 2:].set(0)
    out = jax.block_until_ready(mean_pooling(x, mask))
    ref = _reference(x, mask)
    assert out.shape == (B, H), out.shape
    assert jnp.allclose(out, ref, atol=1e-5, rtol=1e-5), "tiny f32 mismatch"

    # 2) bf16, multi-step grid (batch parallel + S reduction) with Buffered(3).
    B, S, H = 16, 256, 128
    x = jax.random.normal(k3, (B, S, H), dtype=jnp.bfloat16)
    mask = (jax.random.uniform(k4, (B, S)) > 0.2).astype(jnp.int32)
    out = jax.block_until_ready(mean_pooling(x, mask, block_batch=8, block_seq=128))
    ref = _reference(x, mask)
    assert out.shape == (B, H), out.shape
    assert jnp.allclose(out, ref, atol=1e-2, rtol=1e-2), "bf16 tiled mismatch"

    # 3) f32 with awkward B/S exercising the zero-pad path + S accumulation.
    B, S, H = 5, 200, 128
    x = jax.random.normal(k5, (B, S, H), dtype=jnp.float32)
    mask = (jax.random.uniform(k6, (B, S)) > 0.5).astype(jnp.int32)
    out = jax.block_until_ready(mean_pooling(x, mask, block_batch=8, block_seq=128))
    ref = _reference(x, mask)
    assert out.shape == (B, H), out.shape
    assert jnp.allclose(out, ref, atol=1e-5, rtol=1e-5), "padded f32 mismatch"

    print("KERNEL_OK")
</pallas_src>

<mosaic_0001>
module attributes {stable_mosaic.version = 11 : i64} {
  func.func @_mean_pool_kernel(%arg0: i32, %arg1: i32, %arg2: memref<2x8x32xf32, #tpu.memory_space<vmem>>, %arg3: memref<2x1x8xf32, #tpu.memory_space<vmem>>, %arg4: memref<2x32xf32, #tpu.memory_space<vmem>>, %arg5: memref<2x1xf32, #tpu.memory_space<vmem>>) attributes {dimension_semantics = [#tpu.dimension_semantics<parallel>, #tpu.dimension_semantics<arbitrary>], iteration_bounds = array<i64: 1, 1>, scalar_prefetch = 0 : i64, scratch_operands = 1 : i64, tpu.core_type = #tpu.core_type<tc>, window_params = [{transform_indices = @transform_0, window_bounds = array<i64: 2, 8, 32>}, {transform_indices = @transform_1, window_bounds = array<i64: 2, 1, 8>}, {transform_indices = @transform_2, window_bounds = array<i64: 2, 32>}]} {
    %c0_i32 = arith.constant 0 : i32
    %0 = arith.cmpi eq, %arg1, %c0_i32 : i32
    %1 = arith.extui %0 : i1 to i32
    %c0_i32_0 = arith.constant 0 : i32
    %2 = arith.cmpi ne, %1, %c0_i32_0 : i32
    scf.if %2 {
      %cst_17 = arith.constant 0.000000e+00 : f32
      %17 = vector.broadcast %cst_17 : f32 to vector<2x32xf32>
      %c0_18 = arith.constant 0 : index
      %c0_19 = arith.constant 0 : index
      %18 = vector.load %arg4[%c0_18, %c0_19] : memref<2x32xf32, #tpu.memory_space<vmem>>, vector<2x32xf32>
      tpu.vector_store %arg4[%c0_18, %c0_19], %17 {strides = array<i32>} : memref<2x32xf32, #tpu.memory_space<vmem>>, vector<2x32xf32>,
      %cst_20 = arith.constant 0.000000e+00 : f32
      %19 = vector.broadcast %cst_20 : f32 to vector<2x1xf32>
      %c0_21 = arith.constant 0 : index
      %c0_22 = arith.constant 0 : index
      %20 = vector.load %arg5[%c0_21, %c0_22] : memref<2x1xf32, #tpu.memory_space<vmem>>, vector<2x1xf32>
      tpu.vector_store %arg5[%c0_21, %c0_22], %19 {strides = array<i32>} : memref<2x1xf32, #tpu.memory_space<vmem>>, vector<2x1xf32>,
    } else {
    }
    %c0 = arith.constant 0 : index
    %c0_1 = arith.constant 0 : index
    %c0_2 = arith.constant 0 : index
    %3 = vector.load %arg2[%c0, %c0_1, %c0_2] : memref<2x8x32xf32, #tpu.memory_space<vmem>>, vector<2x8x32xf32>
    %c0_3 = arith.constant 0 : index
    %c0_4 = arith.constant 0 : index
    %c0_5 = arith.constant 0 : index
    %4 = vector.load %arg3[%c0_3, %c0_4, %c0_5] : memref<2x1x8xf32, #tpu.memory_space<vmem>>, vector<2x1x8xf32>
    "tpu.trace_start"() <{level = 10 : i32, message = "bqs,bsh->bqh"}> : () -> ()
    %cst = arith.constant dense<0.000000e+00> : vector<2x1x32xf32>
    %5 = tpu.matmul %4, %3, %cst {dimension_numbers = #tpu.dot_dimension_numbers<[2], [1], [1], [2], [0, 0, 0, 1, 1, 2], [0], [0]>, precision = #tpu.contract_precision<fp32>} : vector<2x1x8xf32>, vector<2x8x32xf32>, vector<2x1x32xf32> -> vector<2x1x32xf32>
    "tpu.trace_stop"() : () -> ()
    %6 = vector.shape_cast %5 : vector<2x1x32xf32> to vector<2x32xf32>
    %c0_6 = arith.constant 0 : index
    %c0_7 = arith.constant 0 : index
    %7 = vector.load %arg4[%c0_6, %c0_7] : memref<2x32xf32, #tpu.memory_space<vmem>>, vector<2x32xf32>
    %8 = arith.addf %7, %6 : vector<2x32xf32>
    %c0_8 = arith.constant 0 : index
    %c0_9 = arith.constant 0 : index
    %9 = vector.load %arg4[%c0_8, %c0_9] : memref<2x32xf32, #tpu.memory_space<vmem>>, vector<2x32xf32>
    tpu.vector_store %arg4[%c0_8, %c0_9], %8 {strides = array<i32>} : memref<2x32xf32, #tpu.memory_space<vmem>>, vector<2x32xf32>,
    %c0_10 = arith.constant 0 : index
    %c0_11 = arith.constant 0 : index
    %10 = vector.load %arg5[%c0_10, %c0_11] : memref<2x1xf32, #tpu.memory_space<vmem>>, vector<2x1xf32>
    %cst_12 = arith.constant dense<0.000000e+00> : vector<2x1xf32>
    %11 = vector.multi_reduction <add>, %4, %cst_12 [2] : vector<2x1x8xf32> to vector<2x1xf32>
    %12 = arith.addf %10, %11 : vector<2x1xf32>
    %c0_13 = arith.constant 0 : index
    %c0_14 = arith.constant 0 : index
    %13 = vector.load %arg5[%c0_13, %c0_14] : memref<2x1xf32, #tpu.memory_space<vmem>>, vector<2x1xf32>
    tpu.vector_store %arg5[%c0_13, %c0_14], %12 {strides = array<i32>} : memref<2x1xf32, #tpu.memory_space<vmem>>, vector<2x1xf32>,
    %c0_i32_15 = arith.constant 0 : i32
    %14 = arith.cmpi eq, %arg1, %c0_i32_15 : i32
    %15 = arith.extui %14 : i1 to i32
    %c0_i32_16 = arith.constant 0 : i32
    %16 = arith.cmpi ne, %15, %c0_i32_16 : i32
    scf.if %16 {
      %c0_17 = arith.constant 0 : index
      %c0_18 = arith.constant 0 : index
      %17 = vector.load %arg5[%c0_17, %c0_18] : memref<2x1xf32, #tpu.memory_space<vmem>>, vector<2x1xf32>
      %cst_19 = arith.constant 9.99999971E-10 : f32
      %18 = vector.broadcast %cst_19 : f32 to vector<2x1xf32>
      %19 = arith.maximumf %17, %18 : vector<2x1xf32>
      %cst_20 = arith.constant 1.000000e+00 : f32
      %20 = vector.broadcast %cst_20 : f32 to vector<2x1xf32>
      %21 = arith.divf %20, %19 : vector<2x1xf32>
      %c0_21 = arith.constant 0 : index
      %c0_22 = arith.constant 0 : index
      %22 = vector.load %arg4[%c0_21, %c0_22] : memref<2x32xf32, #tpu.memory_space<vmem>>, vector<2x32xf32>
      %23 = vector.broadcast %21 : vector<2x1xf32> to vector<2x32xf32>
      %24 = arith.mulf %22, %23 : vector<2x32xf32>
      %c0_23 = arith.constant 0 : index
      %c0_24 = arith.constant 0 : index
      %25 = vector.load %arg4[%c0_23, %c0_24] : memref<2x32xf32, #tpu.memory_space<vmem>>, vector<2x32xf32>
      tpu.vector_store %arg4[%c0_23, %c0_24], %24 {strides = array<i32>} : memref<2x32xf32, #tpu.memory_space<vmem>>, vector<2x32xf32>,
    } else {
    }
    return
  }
  func.func @transform_0(%arg0: i32, %arg1: i32) -> (i32, i32, i32) {
    %c0_i32 = arith.constant 0 : i32
    %c0_i32_0 = arith.constant 0 : i32
    return %arg0, %arg1, %c0_i32 : i32, i32, i32
  }
  func.func @transform_1(%arg0: i32, %arg1: i32) -> (i32, i32, i32) {
    %c0_i32 = arith.constant 0 : i32
    %c0_i32_0 = arith.constant 0 : i32
    return %arg0, %c0_i32, %arg1 : i32, i32, i32
  }
  func.func @transform_2(%arg0: i32, %arg1: i32) -> (i32, i32) {
    %c0_i32 = arith.constant 0 : i32
    %c0_i32_0 = arith.constant 0 : i32
    return %arg0, %c0_i32 : i32, i32
  }
}

</mosaic_0001>

<bundles_post_ra>
// kernel: tpu_custom_call.1
= control target key start
LH: loop header
LB: loop body
LE: loop exit
PB: predicated region body
PF: predicated region fallthrough
CT: control target
= control target key end

     0   :  { %7 = vsyncpa [#allocation4], 0  ;;  %s1322_s0 = inlined_call_operand.hbm [shape: f32[2,8,32], index: 0, kind: input, shape index: {}]   ;;  %s1323_s1 = inlined_call_operand.hbm [shape: f32[2,1,8], index: 1, kind: input, shape index: {}]   ;;  %s1324_s2 = inlined_call_operand.hbm [shape: f32[2,32], index: 2, kind: output, shape index: {}]  }
   0x1   :  { %8 = vsyncpa [#allocation7], 0 }
   0x2   :  { %9 = vsyncpa [#allocation5], 0  ;;  %s1198_s9 = smov [#allocation3]   ;;  %s1126_s13 = scalar_lea.hbm %s1322_s0, 256 }
   0x3   :  { %s15_s10 = sshll.u32 %s1198_s9, 4  ;;  %p1127_p0 = scmp.ne.s32.totalorder %s1322_s0, %s1126_s13  ;;  %s16_s10 = int_to_ptr.vmem [resolvable:$true] %s15_s10 }
   0x4   :  { %p1130_p1 = scmp.lt.u32.totalorder %s1126_s13, %s1322_s0 }
   0x6   :  { %p1132_p2 = pnand %p1130_p1, %p1127_p0 }
   0x8   :  { %1135 = shalt.err (!%p1132_p2)
}
   0x9   :  { %s1136_s18 = scalar_lea.vmem %s16_s10, 256  ;;  %p1141_p4 = scmp.lt.s32.totalorder %s16_s10, %s16_s10 }
   0xa   :  { %p1137_p3 = scmp.ne.s32.totalorder %s16_s10, %s1136_s18  ;;  %p1142_p5 = scmp.lt.s32.totalorder %s1136_s18, %s1136_s18 }
   0xc   :  { %p1143_p6 = por %p1142_p5, %p1141_p4 }
   0xe   :  { %p1144_p7 = pnand %p1143_p6, %p1137_p3 }
  0x10   :  { %1147 = shalt.err (!%p1144_p7)
}
  0x11   :  { %s1199_s19 = smov 128   ;;  %s1200_s20 = smov 8  }
  0x12   :  { %21 = dma.hbm_to_vmem [thread:$0]  %s1322_s0, 256, %s16_s10, [#allocation4], %s1199_s19, %s1199_s19, %s1200_s20  }
  0x13   :  { %s1201_s23 = smov [#allocation6]   ;;  %s1148_s27 = scalar_lea.hbm %s1323_s1, 32 }
  0x14   :  { %s27_s24 = sshll.u32 %s1201_s23, 4  ;;  %p1149_p8 = scmp.ne.s32.totalorder %s1323_s1, %s1148_s27  ;;  %s28_s24 = int_to_ptr.vmem [resolvable:$true] %s27_s24 }
  0x15   :  { %p1152_p9 = scmp.lt.u32.totalorder %s1148_s27, %s1323_s1 }
  0x17   :  { %p1154_p10 = pnand %p1152_p9, %p1149_p8 }
  0x19   :  { %1157 = shalt.err (!%p1154_p10)
}
  0x1a   :  { %s1158_s4 = scalar_lea.vmem %s28_s24, 32  ;;  %p1163_p12 = scmp.lt.s32.totalorder %s28_s24, %s28_s24 }
  0x1b   :  { %p1159_p11 = scmp.ne.s32.totalorder %s28_s24, %s1158_s4  ;;  %p1164_p13 = scmp.lt.s32.totalorder %s1158_s4, %s1158_s4 }
  0x1d   :  { %p1165_p0 = por %p1164_p13, %p1163_p12 }
  0x1f   :  { %p1166_p1 = pnand %p1165_p0, %p1159_p11 }
  0x21   :  { %1169 = shalt.err (!%p1166_p1)
}
  0x22   :  { %s1202_s0 = smov 16   ;;  %s1203_s5 = smov 1  }
  0x23   :  { %33 = dma.hbm_to_vmem [thread:$0]  %s1323_s1, 32, %s28_s24, [#allocation7], %s1202_s0, %s1202_s0, %s1203_s5  }
  0x24   :  { %1192 = dma.done.wait [#allocation4], 256  }
  0x25   :  { %1193 = vsyncadd [#allocation4], 4294967040 }
  0x26   :  { %1194 = dma.done.wait [#allocation7], 32  }
  0x27   :  { %1195 = vsyncadd [#allocation7], 4294967264  ;;  %v1204_v0 = vmov 0.0   ;;  %vm1205_vm0 = vmmov 0   ;;  %vm52_vm1 = vcmask 64512   ;;  %vm962_vm2 = vcmask 57344  }
  0x28   :  { %1032 = vmatprep.subr.mxu0 %v1204_v0  ;;  %1062 = vmatprep.subr.mxu1 %v1204_v0  ;;  %v51_v1 = vld [vmem:[#allocation6 + $0x1] sm:$0x1]  ;;  %v50_v2 = vld [vmem:[#allocation6] sm:$0x1]  ;;  %v48_v3 = vld [vmem:[#allocation3] sm:$0xff]  ;;  %vm46_vm3 = vcmask 1024  }
  0x29   :  { %1034 = vmatprep.mubr.msk.f32.mxu0 %vm1205_vm0, %v1204_v0  ;;  %1064 = vmatprep.mubr.msk.f32.mxu1 %vm1205_vm0, %v1204_v0  ;;  %v966_v4 = vsel %vm962_vm2, %v51_v1, 0.0  ;;  %v503_v5 = vsel %vm52_vm1, %v51_v1, 0  ;;  %v54_v6 = vsel %vm52_vm1, %v50_v2, 0  ;;  %v49_v7 = vld [vmem:[#allocation3 + $0x8] sm:$0xff]  ;;  %v57_v10 = vand.u32 4294901760, %v48_v3  ;;  %s1207_s1 = smov [#allocation8]  }
  0x2a   :  { %967 = vadd.xlane.f32.xlu0 %v966_v4  ;;  %v1253_v8 = vand.u32 4294901760, %v503_v5  ;;  %v1255_v9 = vand.u32 4294901760, %v54_v6  ;;  %v1257_v11 = vand.u32 4294901760, %v49_v7  ;;  %v963_v12 = vsel %vm962_vm2, %v50_v2, 0.0  ;;  %47 = vst.msk [vmem:[#allocation2] sm:$0x3] %vm46_vm3, %v1204_v0 }
  0x2b   :  { %1033 = vmatpush3.msra.mxu0 %v57_v10  ;;  %v134_v15 = vsub.f32 %v48_v3, %v57_v10  ;;  %v1206_v29 = vmov 0   ;;  %vm44_vm4 = vcmask 254976   ;;  %vm955_vm5 = vcmask 1041409   ;;  %s998_s8 = sshll.u32 %s1207_s1, 4  ;;  %s999_s8 = int_to_ptr.vmem [resolvable:$true] %s998_s8 }
  0x2c   :  { %v572_v13 = vsub.f32 %v503_v5, %v1253_v8  ;;  %v123_v14 = vsub.f32 %v54_v6, %v1255_v9  ;;  %1063 = vmatpush3.msra.mxu1 %v1257_v11  ;;  %v583_v16 = vsub.f32 %v49_v7, %v1257_v11  ;;  %1037 = vmatprep.subr.mxu0 %v1204_v0  ;;  %s1170_s9 = scalar_lea.vmem %s999_s8, 32  ;;  %p1175_p3 = scmp.lt.s32.totalorder %s999_s8, %s999_s8 }
  0x2d   :  { %1067 = vmatprep.subr.mxu1 %v1204_v0  ;;  %v135_v19 = vand.u32 4294901760, %v134_v15  ;;  %1122 = vset.pattern.permute.xlu1 %v1206_v29  ;;  %45 = vst.msk [vmem:[#allocation8] sm:$0x3] %vm44_vm4, %v1204_v0  ;;  %p1171_p2 = scmp.ne.s32.totalorder %s999_s8, %s1170_s9  ;;  %p1176_p4 = scmp.lt.s32.totalorder %s1170_s9, %s1170_s9 }
  0x2e   :  { %964 = vadd.xlane.f32.xlu0 %v963_v12  ;;  %v124_v17 = vand.u32 4294901760, %v123_v14  ;;  %v573_v18 = vand.u32 4294901760, %v572_v13  ;;  %v584_v20 = vand.u32 4294901760, %v583_v16 }
  0x2f   :  { %v136_v23 = vsub.f32 %v134_v15, %v135_v19  ;;  %1123 = vset.pattern.permute.xlu0 %v1206_v29  ;;  %p1177_p5 = por %p1176_p4, %p1175_p3 }
  0x30   :  { %v125_v21 = vsub.f32 %v123_v14, %v124_v17  ;;  %v574_v22 = vsub.f32 %v572_v13, %v573_v18  ;;  %v585_v24 = vsub.f32 %v583_v16, %v584_v20 }
  0x31   :  { %v137_v27 = vand.u32 4294901760, %v136_v23  ;;  %v961_v32 = vld [vmem:[#allocation2] sm:$0x3]  ;;  %p1178_p6 = pnand %p1177_p5, %p1171_p2 }
  0x32   :  { %v126_v25 = vand.u32 4294901760, %v125_v21  ;;  %v575_v26 = vand.u32 4294901760, %v574_v22  ;;  %v586_v28 = vand.u32 4294901760, %v585_v24 }
  0x34   :  { %1035 = vmatmul.mubr.f32.vlgmr.msra.gmra.mrb[0].mxu0 %v126_v25  ;;  %1065 = vmatmul.mubr.f32.vlgmr.msra.gmra.mrb[0].mxu1 %v575_v26  ;;  %v951_v41 = vld [vmem:[#allocation8] sm:$0x3] }
  0x35   :  { %1038 = vmatpush3.msra.mxu0 %v137_v27  ;;  %1039 = vmatprep.mubr.msk.f32.mxu0 %vm1205_vm0, %v1204_v0 }
  0x36   :  { %1068 = vmatpush3.msra.mxu1 %v586_v28  ;;  %1069 = vmatprep.mubr.msk.f32.mxu1 %vm1205_vm0, %v1204_v0 }
  0x37   :  { %1042 = vmatprep.subr.mxu0 %v1204_v0  ;;  %1072 = vmatprep.subr.mxu1 %v1204_v0 }
  0x3c   :  { %1040 = vmatmul.mubr.f32.vlgmr.msra.gmra.mrb[0].mxu0 %v1255_v9  ;;  %1070 = vmatmul.mubr.f32.vlgmr.msra.gmra.mrb[0].mxu1 %v1253_v8 }
  0x3d   :  { %1043 = vmatpush3.msra.mxu0 %v134_v15  ;;  %1044 = vmatprep.mubr.msk.f32.mxu0 %vm1205_vm0, %v1204_v0 }
  0x3e   :  { %1073 = vmatpush3.msra.mxu1 %v583_v16  ;;  %1074 = vmatprep.mubr.msk.f32.mxu1 %vm1205_vm0, %v1204_v0 }
  0x3f   :  { %1047 = vmatprep.subr.mxu0 %v1204_v0  ;;  %1077 = vmatprep.subr.mxu1 %v1204_v0 }
  0x44   :  { %1045 = vmatmul.mubr.f32.vlgmr.msra.gmra.mrb[0].mxu0 %v123_v14  ;;  %1075 = vmatmul.mubr.f32.vlgmr.msra.gmra.mrb[0].mxu1 %v572_v13 }
  0x45   :  { %1048 = vmatpush3.msra.mxu0 %v57_v10  ;;  %1049 = vmatprep.mubr.msk.f32.mxu0 %vm1205_vm0, %v1204_v0 }
  0x46   :  { %1078 = vmatpush3.msra.mxu1 %v1257_v11  ;;  %1079 = vmatprep.mubr.msk.f32.mxu1 %vm1205_vm0, %v1204_v0 }
  0x47   :  { %1052 = vmatprep.subr.mxu0 %v1204_v0  ;;  %1082 = vmatprep.subr.mxu1 %v1204_v0 }
  0x4c   :  { %1050 = vmatmul.mubr.f32.vlgmr.msra.gmra.mrb[0].mxu0 %v124_v17  ;;  %1080 = vmatmul.mubr.f32.vlgmr.msra.gmra.mrb[0].mxu1 %v573_v18 }
  0x4d   :  { %1053 = vmatpush3.msra.mxu0 %v135_v19  ;;  %1054 = vmatprep.mubr.msk.f32.mxu0 %vm1205_vm0, %v1204_v0 }
  0x4e   :  { %1083 = vmatpush3.msra.mxu1 %v584_v20  ;;  %1084 = vmatprep.mubr.msk.f32.mxu1 %vm1205_vm0, %v1204_v0 }
  0x4f   :  { %1057 = vmatprep.subr.mxu0 %v1204_v0  ;;  %1087 = vmatprep.subr.mxu1 %v1204_v0 }
  0x54   :  { %1055 = vmatmul.mubr.f32.vlgmr.msra.gmra.mrb[0].mxu0 %v1255_v9  ;;  %1085 = vmatmul.mubr.f32.vlgmr.msra.gmra.mrb[0].mxu1 %v1253_v8 }
  0x55   :  { %1058 = vmatpush3.msra.mxu0 %v57_v10  ;;  %1059 = vmatprep.mubr.msk.f32.mxu0 %vm1205_vm0, %v1204_v0 }
  0x56   :  { %1088 = vmatpush3.msra.mxu1 %v1257_v11  ;;  %1089 = vmatprep.mubr.msk.f32.mxu1 %vm1205_vm0, %v1204_v0 }
  0x5c   :  { %1060 = vmatmul.mubr.f32.vlgmr.msra.gmra.mrb[0].mxu0 %v1255_v9  ;;  %1090 = vmatmul.mubr.f32.vlgmr.msra.gmra.mrb[0].mxu1 %v1253_v8 }
  0xb7   :  { %v968_v30 = vpop.xlane.xlu0 %967 }
  0xb8   :  { %v971_v31 = vrot.slane %v968_v30, 7 }
  0xbb   :  { %v965_v33 = vpop.xlane.xlu0 %964 }
  0xbc   :  { %v972_v34 = vsel %vm955_vm5, %v971_v31, %v965_v33 }
  0xbd   :  { %v974_v35 = vadd.f32 %v972_v34, %v961_v32 }
  0xbf   :  { %976 = vst.msk [vmem:[#allocation2] sm:$0x3] %vm46_vm3, %v974_v35 }
  0xc6   :  { %v980_v36 = vld [vmem:[#allocation2] sm:$0x3] }
  0xc7   :  { %v981_v37 = vmax.f32 %v980_v36, 1e-09 }
  0xc9   :  { %1124 = vrcp.f32 %v981_v37 }
  0xd3   :  { %v1125_v38 = vpop.eup %1124 }
  0xd4   :  { %987 = vperm.xlu1 %1122, %v1125_v38  }
 0x12f   :  { %v498_v39 = vpop.f32.mrb[0].mxu0  ;;  %v947_v40 = vpop.f32.mrb[0].mxu1 }
 0x130   :  { %v954_v42 = vrot.slane %v947_v40, 7  ;;  %v1061_v43 = vpop.f32.mrb[1].mxu0  ;;  %v1091_v44 = vpop.f32.mrb[1].mxu1 }
 0x132   :  { %v956_v45 = vsel %vm955_vm5, %v954_v42, %v498_v39 }
 0x133   :  { %v958_v46 = vadd.f32 %v956_v45, %v951_v41 }
 0x135   :  { %960 = vst.msk [vmem:[#allocation8] sm:$0x3] %vm44_vm4, %v958_v46 }
 0x13c   :  { %v984_v48 = vld [vmem:[#allocation8] sm:$0x3] }
 0x153   :  { %v988_v47 = vpop.permute.xlu1 %987 }
 0x154   :  { %v990_v49 = vmul.f32 %v988_v47, %v984_v48 }
 0x156   :  { %991 = vst.msk [vmem:[#allocation8] sm:$0x3] %vm44_vm4, %v990_v49 }
 0x157   :  { %1181 = shalt.err (!%p1178_p6)
}
 0x158   :  { %s1182_s12 = scalar_lea.hbm %s1324_s2, 32 }
 0x159   :  { %p1183_p7 = scmp.ne.s32.totalorder %s1324_s2, %s1182_s12  ;;  %p1186_p8 = scmp.lt.u32.totalorder %s1182_s12, %s1324_s2 }
 0x15b   :  { %p1188_p9 = pnand %p1186_p8, %p1183_p7 }
 0x15d   :  { %1191 = shalt.err (!%p1188_p9)
}
 0x15e   :  { %1001 = dma.vmem_to_hbm [thread:$0]  %s999_s8, 32, %s1324_s2, [#allocation5]  }
 0x15f   :  { %1196 = dma.done.wait [#allocation5], 32  }
 0x160   :  { %1197 = vsyncadd [#allocation5], 4294967264 }
 0x161   :  { %1005 = vsyncpa [#allocation4], 1 }
 0x162   :  { %1006 = vsyncpa [#allocation7], 1 }
 0x163   :  { %1007 = vsyncpa [#allocation5], 1 }

</bundles_post_ra>
